<compile_context>
chip_gen: v6e
topology: v6e:2x2x1
jax: 0.10.0
libtpu: 0.0.40
codegen_flags: <defaults>
</compile_context>

<pallas_src>
import jax
import jax.numpy as jnp
from jax.experimental import pallas as pl
from jax.experimental.pallas import tpu as pltpu


def esbert_pool_kernel(x_ref, mask_ref, w_ref, b_ref,
                       tok_ref, cls_ref, sent_ref,
                       sumx_ref, summask_ref):
    """Fused dense projection + masked mean pooling (one (batch, seq) tile).

    x_ref     : [TB, TS, Hin] f32   (word + entity) embeddings tile
    mask_ref  : [TB, TS, 1]   f32   attention mask tile (pre-cast, pre-expanded)
    w_ref     : [Hin, H]      f32   projection weight (resident)
    b_ref     : [1, H]        f32   projection bias   (resident)
    tok_ref   : [TB, TS, H]   f32   token_embeddings tile (output)
    cls_ref   : [TB, H]       f32   cls_token_embeddings (output, seq-resident)
    sent_ref  : [TB, H]       f32   sentence_embedding   (output, seq-resident)
    sumx_ref  : [TB, Hin]     f32   scratch: running sum_s(mask * x)
    summask_ref:[TB, 1]       f32   scratch: running sum_s(mask)
    """
    si = pl.program_id(1)
    last_si = pl.num_programs(1) - 1

    @pl.when(si == 0)
    def _init():
        sumx_ref[...] = jnp.zeros_like(sumx_ref)
        summask_ref[...] = jnp.zeros_like(summask_ref)

    x = x_ref[...]                                  # [TB, TS, Hin]
    m = mask_ref[...]                               # [TB, TS, 1]
    tb, ts, hin = x.shape
    h = w_ref.shape[1]

    # ---- Dense projection on the MXU: flatten (TB, TS) -> M to keep it dense.
    w_bf = w_ref[...].astype(jnp.bfloat16)          # bf16 MXU inputs, f32 accum
    x2d = x.reshape(tb * ts, hin).astype(jnp.bfloat16)
    tok2d = jnp.dot(x2d, w_bf, preferred_element_type=jnp.float32)
    tok2d = tok2d + b_ref[...]                      # [TB*TS, H] (+[1,H] broadcast)
    tok = tok2d.reshape(tb, ts, h)
    tok_ref[...] = tok.astype(tok_ref.dtype)

    @pl.when(si == 0)
    def _cls():
        cls_ref[...] = tok[:, 0, :].astype(cls_ref.dtype)

    # ---- Pool BEFORE projecting: accumulate masked sums on the small x tensor.
    sumx_ref[...] += jnp.sum(x * m, axis=1)         # [TB, Hin]
    summask_ref[...] += jnp.sum(m, axis=1)          # [TB, 1]

    @pl.when(si == last_si)
    def _finalize():
        sum_x = sumx_ref[...]                       # [TB, Hin]
        sum_m = summask_ref[...]                    # [TB, 1]
        # sum_s(mask * (xW + b)) = (sum_s mask*x) @ W + (sum_s mask) * b
        pooled = jnp.dot(sum_x.astype(jnp.bfloat16), w_bf,
                         preferred_element_type=jnp.float32)
        pooled = pooled + sum_m * b_ref[...]        # [TB, H]
        inv = pl.reciprocal(jnp.maximum(sum_m, 1e-9), approx=True)
        sent_ref[...] = (pooled * inv).astype(sent_ref.dtype)


def entity_sbert_forward(features, params, *, block_b=8, block_s=128):
    """JAX wrapper reproducing EntitySBert.forward semantics."""
    input_ids = features["input_ids"]
    entity_ids = features["entity_type_ids"]
    attention_mask = features["attention_mask"]

    # Glue: embedding lookups (synthetic esbert input embeddings).
    # TODO(synk): fuse these gathers into the kernel with scalar-prefetch row
    # DMA so the [B, S, Hin] activation never round-trips through HBM.
    x = (params["word_emb"][input_ids]
         + params["entity_emb"][entity_ids]).astype(jnp.float32)   # [B, S, Hin]

    B, S, Hin = x.shape
    H = params["w"].shape[1]

    tb = min(block_b, B)
    ts = min(block_s, S)
    assert B % tb == 0 and S % ts == 0, "B/S must be divisible by tile sizes"
    # (8,128) layout rule: tiled dims must be 8-aligned or span the full axis.
    assert (ts % 8 == 0) or (ts == S)
    assert (tb % 8 == 0) or (tb == B)

    mask_f = attention_mask.astype(jnp.float32)[:, :, None]        # [B, S, 1]

    grid = (B // tb, S // ts)

    tok, cls, sent = pl.pallas_call(
        esbert_pool_kernel,
        out_shape=(
            jax.ShapeDtypeStruct((B, S, H), jnp.float32),   # token_embeddings
            jax.ShapeDtypeStruct((B, H), jnp.float32),      # cls_token_embeddings
            jax.ShapeDtypeStruct((B, H), jnp.float32),      # sentence_embedding
        ),
        grid_spec=pltpu.PrefetchScalarGridSpec(
            num_scalar_prefetch=0,
            grid=grid,
            in_specs=[
                pl.BlockSpec((tb, ts, Hin), lambda bi, si: (bi, si, 0)),  # x
                pl.BlockSpec((tb, ts, 1), lambda bi, si: (bi, si, 0)),    # mask
                pl.BlockSpec((Hin, H), lambda bi, si: (0, 0)),            # w
                pl.BlockSpec((1, H), lambda bi, si: (0, 0)),              # b
            ],
            out_specs=[
                pl.BlockSpec((tb, ts, H), lambda bi, si: (bi, si, 0)),    # tok
                pl.BlockSpec((tb, H), lambda bi, si: (bi, 0)),            # cls
                pl.BlockSpec((tb, H), lambda bi, si: (bi, 0)),            # sent
            ],
            scratch_shapes=[
                pltpu.VMEM((tb, Hin), jnp.float32),   # running sum_s(mask * x)
                pltpu.VMEM((tb, 1), jnp.float32),     # running sum_s(mask)
            ],
        ),
        compiler_params=pltpu.CompilerParams(
            # batch axis shards across TensorCores (v7x); seq axis carries the
            # pooling accumulator so it must be "arbitrary".
            dimension_semantics=("parallel", "arbitrary"),
            # Explicit budget: fine on v5e/v6e (128 MiB) and under v7x's 64 MiB.
            vmem_limit_bytes=48 * 1024 * 1024,
        ),
    )(x, mask_f, params["w"], params["b"])

    out = dict(features)
    out.update(
        {
            "token_embeddings": tok,
            "cls_token_embeddings": cls,
            "attention_mask": attention_mask,
            "sentence_embedding": sent,
        }
    )
    return out


def _reference_forward(features, params):
    """Pure-JAX f32 reference for correctness checking."""
    x = (params["word_emb"][features["input_ids"]]
         + params["entity_emb"][features["entity_type_ids"]]).astype(jnp.float32)
    tok = jnp.einsum("bsi,ih->bsh", x, params["w"]) + params["b"]
    m = features["attention_mask"][:, :, None].astype(jnp.float32)
    sent = jnp.sum(tok * m, axis=1) / jnp.maximum(jnp.sum(m, axis=1), 1e-9)
    return tok, sent


if __name__ == "__main__":
    key = jax.random.PRNGKey(0)
    B, S, Hin, H = 2, 16, 32, 32
    VOCAB, N_ENT = 50, 4

    k_w, k_b, k_we, k_ee, k_ids, k_ent = jax.random.split(key, 6)

    params = {
        "word_emb": jax.random.normal(k_we, (VOCAB, Hin), jnp.float32) * 0.02,
        "entity_emb": jax.random.normal(k_ee, (N_ENT, Hin), jnp.float32) * 0.02,
        "w": jax.random.normal(k_w, (Hin, H), jnp.float32) * 0.05,
        "b": jax.random.normal(k_b, (1, H), jnp.float32) * 0.01,
    }

    input_ids = jax.random.randint(k_ids, (B, S), 0, VOCAB, dtype=jnp.int32)
    entity_type_ids = jax.random.randint(k_ent, (B, S), 0, N_ENT, dtype=jnp.int32)
    # Valid tokens in a left-aligned prefix (lengths 13 and 7).
    lengths = jnp.array([13, 7], dtype=jnp.int32)
    attention_mask = (jnp.arange(S)[None, :] < lengths[:, None]).astype(jnp.int32)

    features = {
        "input_ids": input_ids,
        "entity_type_ids": entity_type_ids,
        "attention_mask": attention_mask,
    }

    # block_s=8 with S=16 gives a 2-step seq grid so the accumulator/finalize
    # path is exercised; block_b=2 covers the whole (tiny) batch.
    out = entity_sbert_forward(features, params, block_b=2, block_s=8)
    jax.block_until_ready(out["sentence_embedding"])

    tok_ref, sent_ref = _reference_forward(features, params)

    # bf16 MXU inputs + EUP approx reciprocal -> loose tolerance vs f32 reference.
    assert jnp.allclose(out["token_embeddings"], tok_ref, atol=3e-3, rtol=3e-2)
    assert jnp.allclose(out["sentence_embedding"], sent_ref, atol=3e-3, rtol=3e-2)
    assert jnp.allclose(out["cls_token_embeddings"],
                        out["token_embeddings"][:, 0, :], atol=1e-6)
    assert out["sentence_embedding"].shape == (B, H)
    assert out["token_embeddings"].shape == (B, S, H)
    assert out["cls_token_embeddings"].shape == (B, H)

    print("KERNEL_OK")
</pallas_src>

<mosaic_0001>
module attributes {stable_mosaic.version = 11 : i64} {
  func.func @esbert_pool_kernel(%arg0: i32, %arg1: i32, %arg2: memref<2x8x32xf32, #tpu.memory_space<vmem>>, %arg3: memref<2x8x1xf32, #tpu.memory_space<vmem>>, %arg4: memref<32x32xf32, #tpu.memory_space<vmem>>, %arg5: memref<1x32xf32, #tpu.memory_space<vmem>>, %arg6: memref<2x8x32xf32, #tpu.memory_space<vmem>>, %arg7: memref<2x32xf32, #tpu.memory_space<vmem>>, %arg8: memref<2x32xf32, #tpu.memory_space<vmem>>, %arg9: memref<2x32xf32, #tpu.memory_space<vmem>>, %arg10: memref<2x1xf32, #tpu.memory_space<vmem>>) attributes {dimension_semantics = [#tpu.dimension_semantics<parallel>, #tpu.dimension_semantics<arbitrary>], iteration_bounds = array<i64: 1, 2>, scalar_prefetch = 0 : i64, scratch_operands = 2 : i64, tpu.core_type = #tpu.core_type<tc>, window_params = [{transform_indices = @transform_0, window_bounds = array<i64: 2, 8, 32>}, {transform_indices = @transform_1, window_bounds = array<i64: 2, 8, 1>}, {pipeline_mode = #tpu.pipeline_mode<synchronous>, transform_indices = @transform_2, window_bounds = array<i64: 32, 32>}, {pipeline_mode = #tpu.pipeline_mode<synchronous>, transform_indices = @transform_3, window_bounds = array<i64: 1, 32>}, {transform_indices = @transform_4, window_bounds = array<i64: 2, 8, 32>}, {transform_indices = @transform_5, window_bounds = array<i64: 2, 32>}, {transform_indices = @transform_6, window_bounds = array<i64: 2, 32>}]} {
    %c0_i32 = arith.constant 0 : i32
    %0 = arith.cmpi eq, %arg1, %c0_i32 : i32
    %1 = arith.extui %0 : i1 to i32
    %c0_i32_0 = arith.constant 0 : i32
    %2 = arith.cmpi ne, %1, %c0_i32_0 : i32
    scf.if %2 {
      %cst_26 = arith.constant 0.000000e+00 : f32
      %31 = vector.broadcast %cst_26 : f32 to vector<2x32xf32>
      %c0_27 = arith.constant 0 : index
      %c0_28 = arith.constant 0 : index
      %32 = vector.load %arg9[%c0_27, %c0_28] : memref<2x32xf32, #tpu.memory_space<vmem>>, vector<2x32xf32>
      tpu.vector_store %arg9[%c0_27, %c0_28], %31 {strides = array<i32>} : memref<2x32xf32, #tpu.memory_space<vmem>>, vector<2x32xf32>,
      %cst_29 = arith.constant 0.000000e+00 : f32
      %33 = vector.broadcast %cst_29 : f32 to vector<2x1xf32>
      %c0_30 = arith.constant 0 : index
      %c0_31 = arith.constant 0 : index
      %34 = vector.load %arg10[%c0_30, %c0_31] : memref<2x1xf32, #tpu.memory_space<vmem>>, vector<2x1xf32>
      tpu.vector_store %arg10[%c0_30, %c0_31], %33 {strides = array<i32>} : memref<2x1xf32, #tpu.memory_space<vmem>>, vector<2x1xf32>,
    } else {
    }
    %c0 = arith.constant 0 : index
    %c0_1 = arith.constant 0 : index
    %c0_2 = arith.constant 0 : index
    %3 = vector.load %arg2[%c0, %c0_1, %c0_2] : memref<2x8x32xf32, #tpu.memory_space<vmem>>, vector<2x8x32xf32>
    %c0_3 = arith.constant 0 : index
    %c0_4 = arith.constant 0 : index
    %c0_5 = arith.constant 0 : index
    %4 = vector.load %arg3[%c0_3, %c0_4, %c0_5] : memref<2x8x1xf32, #tpu.memory_space<vmem>>, vector<2x8x1xf32>
    %c0_6 = arith.constant 0 : index
    %c0_7 = arith.constant 0 : index
    %5 = vector.load %arg4[%c0_6, %c0_7] : memref<32x32xf32, #tpu.memory_space<vmem>>, vector<32x32xf32>
    %6 = arith.truncf %5 : vector<32x32xf32> to vector<32x32xbf16>
    %7 = vector.shape_cast %3 : vector<2x8x32xf32> to vector<16x32xf32>
    %8 = arith.truncf %7 : vector<16x32xf32> to vector<16x32xbf16>
    %cst = arith.constant dense<0.000000e+00> : vector<16x32xf32>
    %9 = tpu.matmul %8, %6, %cst {dimension_numbers = #tpu.dot_dimension_numbers<[1], [0], [0], [1], [0, 0, 1, 1], [], []>} : vector<16x32xbf16>, vector<32x32xbf16>, vector<16x32xf32> -> vector<16x32xf32>
    %c0_8 = arith.constant 0 : index
    %c0_9 = arith.constant 0 : index
    %10 = vector.load %arg5[%c0_8, %c0_9] : memref<1x32xf32, #tpu.memory_space<vmem>>, vector<1x32xf32>
    %11 = vector.broadcast %10 : vector<1x32xf32> to vector<16x32xf32>
    %12 = arith.addf %9, %11 : vector<16x32xf32>
    %13 = vector.shape_cast %12 : vector<16x32xf32> to vector<2x8x32xf32>
    %c0_10 = arith.constant 0 : index
    %c0_11 = arith.constant 0 : index
    %c0_12 = arith.constant 0 : index
    %14 = vector.load %arg6[%c0_10, %c0_11, %c0_12] : memref<2x8x32xf32, #tpu.memory_space<vmem>>, vector<2x8x32xf32>
    tpu.vector_store %arg6[%c0_10, %c0_11, %c0_12], %13 {strides = array<i32>} : memref<2x8x32xf32, #tpu.memory_space<vmem>>, vector<2x8x32xf32>,
    %c0_i32_13 = arith.constant 0 : i32
    %15 = arith.cmpi eq, %arg1, %c0_i32_13 : i32
    %16 = arith.extui %15 : i1 to i32
    %c0_i32_14 = arith.constant 0 : i32
    %17 = arith.cmpi ne, %16, %c0_i32_14 : i32
    scf.if %17 {
      %31 = vector.extract_strided_slice %13 {offsets = [0, 0, 0], sizes = [2, 1, 32], strides = [1, 1, 1]} : vector<2x8x32xf32> to vector<2x1x32xf32>
      %32 = vector.shape_cast %31 : vector<2x1x32xf32> to vector<2x32xf32>
      %c0_26 = arith.constant 0 : index
      %c0_27 = arith.constant 0 : index
      %33 = vector.load %arg7[%c0_26, %c0_27] : memref<2x32xf32, #tpu.memory_space<vmem>>, vector<2x32xf32>
      tpu.vector_store %arg7[%c0_26, %c0_27], %32 {strides = array<i32>} : memref<2x32xf32, #tpu.memory_space<vmem>>, vector<2x32xf32>,
    } else {
    }
    %c0_15 = arith.constant 0 : index
    %c0_16 = arith.constant 0 : index
    %18 = vector.load %arg9[%c0_15, %c0_16] : memref<2x32xf32, #tpu.memory_space<vmem>>, vector<2x32xf32>
    %19 = vector.broadcast %4 : vector<2x8x1xf32> to vector<2x8x32xf32>
    %20 = arith.mulf %3, %19 : vector<2x8x32xf32>
    %cst_17 = arith.constant dense<0.000000e+00> : vector<2x32xf32>
    %21 = vector.multi_reduction <add>, %20, %cst_17 [1] : vector<2x8x32xf32> to vector<2x32xf32>
    %22 = arith.addf %18, %21 : vector<2x32xf32>
    %c0_18 = arith.constant 0 : index
    %c0_19 = arith.constant 0 : index
    %23 = vector.load %arg9[%c0_18, %c0_19] : memref<2x32xf32, #tpu.memory_space<vmem>>, vector<2x32xf32>
    tpu.vector_store %arg9[%c0_18, %c0_19], %22 {strides = array<i32>} : memref<2x32xf32, #tpu.memory_space<vmem>>, vector<2x32xf32>,
    %c0_20 = arith.constant 0 : index
    %c0_21 = arith.constant 0 : index
    %24 = vector.load %arg10[%c0_20, %c0_21] : memref<2x1xf32, #tpu.memory_space<vmem>>, vector<2x1xf32>
    %cst_22 = arith.constant dense<0.000000e+00> : vector<2x1xf32>
    %25 = vector.multi_reduction <add>, %4, %cst_22 [1] : vector<2x8x1xf32> to vector<2x1xf32>
    %26 = arith.addf %24, %25 : vector<2x1xf32>
    %c0_23 = arith.constant 0 : index
    %c0_24 = arith.constant 0 : index
    %27 = vector.load %arg10[%c0_23, %c0_24] : memref<2x1xf32, #tpu.memory_space<vmem>>, vector<2x1xf32>
    tpu.vector_store %arg10[%c0_23, %c0_24], %26 {strides = array<i32>} : memref<2x1xf32, #tpu.memory_space<vmem>>, vector<2x1xf32>,
    %c1_i32 = arith.constant 1 : i32
    %28 = arith.cmpi eq, %arg1, %c1_i32 : i32
    %29 = arith.extui %28 : i1 to i32
    %c0_i32_25 = arith.constant 0 : i32
    %30 = arith.cmpi ne, %29, %c0_i32_25 : i32
    scf.if %30 {
      %c0_26 = arith.constant 0 : index
      %c0_27 = arith.constant 0 : index
      %31 = vector.load %arg9[%c0_26, %c0_27] : memref<2x32xf32, #tpu.memory_space<vmem>>, vector<2x32xf32>
      %c0_28 = arith.constant 0 : index
      %c0_29 = arith.constant 0 : index
      %32 = vector.load %arg10[%c0_28, %c0_29] : memref<2x1xf32, #tpu.memory_space<vmem>>, vector<2x1xf32>
      %33 = arith.truncf %31 : vector<2x32xf32> to vector<2x32xbf16>
      %cst_30 = arith.constant dense<0.000000e+00> : vector<2x32xf32>
      %34 = tpu.matmul %33, %6, %cst_30 {dimension_numbers = #tpu.dot_dimension_numbers<[1], [0], [0], [1], [0, 0, 1, 1], [], []>} : vector<2x32xbf16>, vector<32x32xbf16>, vector<2x32xf32> -> vector<2x32xf32>
      %c0_31 = arith.constant 0 : index
      %c0_32 = arith.constant 0 : index
      %35 = vector.load %arg5[%c0_31, %c0_32] : memref<1x32xf32, #tpu.memory_space<vmem>>, vector<1x32xf32>
      %36 = vector.broadcast %32 : vector<2x1xf32> to vector<2x32xf32>
      %37 = vector.broadcast %35 : vector<1x32xf32> to vector<2x32xf32>
      %38 = arith.mulf %36, %37 : vector<2x32xf32>
      %39 = arith.addf %34, %38 : vector<2x32xf32>
      %cst_33 = arith.constant 9.99999971E-10 : f32
      %40 = vector.broadcast %cst_33 : f32 to vector<2x1xf32>
      %41 = arith.maximumf %32, %40 : vector<2x1xf32>
      %42 = tpu.reciprocal %41 {approx = true} : vector<2x1xf32> -> vector<2x1xf32>
      %43 = vector.broadcast %42 : vector<2x1xf32> to vector<2x32xf32>
      %44 = arith.mulf %39, %43 : vector<2x32xf32>
      %c0_34 = arith.constant 0 : index
      %c0_35 = arith.constant 0 : index
      %45 = vector.load %arg8[%c0_34, %c0_35] : memref<2x32xf32, #tpu.memory_space<vmem>>, vector<2x32xf32>
      tpu.vector_store %arg8[%c0_34, %c0_35], %44 {strides = array<i32>} : memref<2x32xf32, #tpu.memory_space<vmem>>, vector<2x32xf32>,
    } else {
    }
    return
  }
  func.func @transform_0(%arg0: i32, %arg1: i32) -> (i32, i32, i32) {
    %c0_i32 = arith.constant 0 : i32
    %c0_i32_0 = arith.constant 0 : i32
    return %arg0, %arg1, %c0_i32 : i32, i32, i32
  }
  func.func @transform_1(%arg0: i32, %arg1: i32) -> (i32, i32, i32) {
    %c0_i32 = arith.constant 0 : i32
    %c0_i32_0 = arith.constant 0 : i32
    return %arg0, %arg1, %c0_i32 : i32, i32, i32
  }
  func.func @transform_2(%arg0: i32, %arg1: i32) -> (i32, i32) {
    %c0_i32 = arith.constant 0 : i32
    %c0_i32_0 = arith.constant 0 : i32
    %c0_i32_1 = arith.constant 0 : i32
    return %c0_i32, %c0_i32_0 : i32, i32
  }
  func.func @transform_3(%arg0: i32, %arg1: i32) -> (i32, i32) {
    %c0_i32 = arith.constant 0 : i32
    %c0_i32_0 = arith.constant 0 : i32
    %c0_i32_1 = arith.constant 0 : i32
    return %c0_i32, %c0_i32_0 : i32, i32
  }
  func.func @transform_4(%arg0: i32, %arg1: i32) -> (i32, i32, i32) {
    %c0_i32 = arith.constant 0 : i32
    %c0_i32_0 = arith.constant 0 : i32
    return %arg0, %arg1, %c0_i32 : i32, i32, i32
  }
  func.func @transform_5(%arg0: i32, %arg1: i32) -> (i32, i32) {
    %c0_i32 = arith.constant 0 : i32
    %c0_i32_0 = arith.constant 0 : i32
    return %arg0, %c0_i32 : i32, i32
  }
  func.func @transform_6(%arg0: i32, %arg1: i32) -> (i32, i32) {
    %c0_i32 = arith.constant 0 : i32
    %c0_i32_0 = arith.constant 0 : i32
    return %arg0, %c0_i32 : i32, i32
  }
}

</mosaic_0001>

<bundles_post_ra>
// kernel: tpu_custom_call.1
= control target key start
LH: loop header
LB: loop body
LE: loop exit
PB: predicated region body
PF: predicated region fallthrough
CT: control target
= control target key end

     0   :  { %s1364_s0 = inlined_call_operand.vmem [shape: f32[2,16,32], index: 0, kind: input, shape index: {}]   ;;  %s1365_s1 = inlined_call_operand.vmem [shape: f32[2,16,1], index: 1, kind: input, shape index: {}]   ;;  %s1366_s2 = inlined_call_operand.hbm [shape: f32[32,32], index: 2, kind: input, shape index: {}]   ;;  %s1367_s3 = inlined_call_operand.vmem [shape: f32[1,32], index: 3, kind: input, shape index: {}]   ;;  %s1368_s4 = inlined_call_operand.hbm [shape: f32[2,16,32], index: 4, kind: output, shape index: {0}]   ;;  %s1369_s5 = inlined_call_operand.hbm [shape: f32[2,32], index: 5, kind: output, shape index: {1}]   ;;  %s1370_s6 = inlined_call_operand.hbm [shape: f32[2,32], index: 6, kind: output, shape index: {2}]  }
   0x1   :  { %1375 = sst [smem:[#allocation17_spill]] %s1366_s2 }
   0x2   :  { %12 = vsyncpa [#allocation7], 0 }
   0x3   :  { %13 = vsyncpa [#allocation8], 0 }
   0x4   :  { %15 = vsyncpa [#allocation8 + $0x1], 0 }
   0x5   :  { %16 = vsyncpa [#allocation11], 0  ;;  %s1148_s21 = smov 0   ;;  %s1150_s22 = smov 0  }
   0x6   :  { %s1152_s23 = smov 0   ;;  %s1154_s24 = smov 0  }
   0x7   :  { %s1156_s25 = smov 0   ;;  %s1158_s26 = smov 0  }
   0x8 LB: > { %s790_s27 = sadd.s32 4294967295, %s1095_s26   ;;  %s791_s28 = sadd.s32 4294967294, %s1095_s26   ;;  %s1095_s26 = sphi %s1158_s26, %s22_s26   ;;  %s1091_s25 = sphi %s1156_s25, %s1392_s25   ;;  %s1087_s24 = sphi %s1154_s24, %s1391_s24   ;;  %s1083_s23 = sphi %s1152_s23, %s1390_s23   ;;  %s1079_s22 = sphi %s1150_s22, %s1389_s22   ;;  %s1075_s21 = sphi %s1148_s21, %s1388_s21  }
   0x9   : > { %s31_s29 = sadd.s32 1, %s1091_s25  ;;  %s43_s30 = sadd.s32 1, %s1083_s23 }
   0xa   : > { %p32_p0 = scmp.ge.s32.totalorder %s31_s29, 2  ;;  %p50_p1 = scmp.ne.s32.totalorder %s1083_s23, %s1079_s22 }
   0xb   : > { %p51_p2 = scmp.eq.s32.totalorder %s1095_s26, 0  ;;  %p1185_p3 = scmp.eq.s32.totalorder %s790_s27, 1 }
   0xc   : > { %s1394_s29 = smov (%p32_p0, %s31_s29), 0  ;;  %p157_p6 = scmp.ne.s32.totalorder %s1079_s22, %s1075_s21 }
   0xd   : > { %s1376_s7 = scalar_select %p1185_p3, 1, 0 }
   0xe   : > { %1377 = sst [smem:[#allocation16_spill]] %s1394_s29  ;;  %p1191_p4 = por %p51_p2, %p50_p1 }
   0xf   : > { %p1197_p5 = por %p1185_p3, %p50_p1  ;;  %s39_s10 = ssub.s32 %s1091_s25, %s1394_s29 }
  0x10   : > { %p41_p7 = scmp.eq.s32.totalorder %s39_s10, 0  ;;  %p158_p8 = scmp.eq.s32.totalorder %s791_s28, 1 }
  0x11   : > { %s1379_s9 = scalar_select %p1197_p5, 1, 0 }
  0x12   : > { %p792_p9 = scmp.ge.s32.totalorder %s1095_s26, 1  ;;  %p217_p10 = scmp.lt.s32.totalorder %s1095_s26, 3 }
  0x13   : > { %s1208_s11 = scalar_select %p41_p7, %s1083_s23, %s43_s30  }
  0x14   : > { %p1210_p11 = por %p158_p8, %p157_p6  ;;  %p1214_p12 = pnand %p792_p9, %p217_p10 }
  0x15   : > { %p1218_p13 = scmp.eq.s32.totalorder %s790_s27, 0  ;;  %s1097_s15 = smov [#allocation6]  }
  0x16   : > { %s1380_s12 = scalar_select %p1210_p11, 1, 0 }
  0x17   : > { %p855_p0 = pneg %p1214_p12  ;;  %s229_s16 = sshll.u32 %s1097_s15, 4  ;;  %s230_s16 = int_to_ptr.vmem [resolvable:$true] %s229_s16 }
  0x18   : > { %s948_s17 = scalar_lea.vmem %s230_s16, 512  ;;  %p956_p9 = scmp.lt.s32.totalorder %s230_s16, %s230_s16 }
  0x19   : > { %p856_p1 = pnand %p1218_p13, %p855_p0  ;;  %p949_p6 = scmp.ne.s32.totalorder %s230_s16, %s948_s17 }
  0x1a   : > { %p957_p10 = scmp.lt.s32.totalorder %s948_s17, %s948_s17 }
  0x1b   : > { %p939_p2 = pneg %p856_p1 }
  0x1c   : > { %p958_p11 = por %p957_p10, %p956_p9 }
  0x1d   : > { %p951_p7 = pnand %p949_p6, %p939_p2 }
  0x1f   : > { %p952_p8 = pneg %p951_p7 }
  0x21   : > { %p959_p5 = pnand %p958_p11, %p952_p8 }
  0x23   : > { %962 = shalt.err (!%p959_p5)
}
  0x24   : > { %s1098_s18 = smov 128   ;;  %s1099_s19 = smov 8  }
  0x25   : > { %s1383_s2 = sld [smem:[#allocation17_spill]]  ;;  %p794_p3 = scmp.ge.s32.totalorder %s1095_s26, 2 }
  0x27   : > { %242 = sbr.rel (%p794_p3) target bundleno = 54 (0x36), region = 24 }
  0x2b   : > { %858 = dma.hbm_to_vmem [thread:$0]  (!%p856_p1), %s1383_s2, 512, %s230_s16, [#allocation7], %s1098_s18, %s1098_s18, %s1099_s19  }
  0x2c   : > { %245 = sbr.rel (!%p1191_p4) target bundleno = 49 (0x31), region = 28  ;;  %s247_s28 = sand.u32 (%p1191_p4), 1, %s1083_s23  }
  0x2d   : > { %s796_s30 = sshll.u32 (%p1191_p4), %s1091_s25, 3  ;;  %s795_s10 = sshll.u32 (%p1191_p4), %s247_s28, 4 }
  0x2e   : > { %s254_s29 = scalar_lea.vmem (%p1191_p4), %s1364_s0, %s796_s30  ;;  %s249_s16 = scalar_lea.vmem (%p1191_p4), [#allocation4], %s795_s10 }
  0x2f   : > { %v285_v0 = vld [vmem:[%s254_s29] sm:$0xff] (%p1191_p4)  ;;  %v287_v1 = vld [vmem:[%s254_s29 + $0x10] sm:$0xff] (%p1191_p4) }
  0x30   : > { %286 = vst [vmem:[%s249_s16] sm:$0xff] (%p1191_p4), %v285_v0  ;;  %288 = vst [vmem:[%s249_s16 + $0x8] sm:$0xff] (%p1191_p4), %v287_v1 }
  0x31 PF: > { %294 = sbr.rel (!%p1191_p4) target bundleno = 54 (0x36), region = 66  ;;  %s296_s18 = sand.u32 (%p1191_p4), 1, %s1083_s23  }
  0x32   : > { %s798_s19 = sshll.u32 (%p1191_p4), %s1091_s25, 3  ;;  %s797_s20 = sshll.u32 (%p1191_p4), %s296_s18, 4 }
  0x33   : > { %s303_s2 = scalar_lea.vmem (%p1191_p4), %s1365_s1, %s798_s19  ;;  %s298_s30 = scalar_lea.vmem (%p1191_p4), [#allocation5], %s797_s20 }
  0x34   : > { %v334_v2 = vld [vmem:[%s303_s2] sm:$0xff] (%p1191_p4)  ;;  %v336_v3 = vld [vmem:[%s303_s2 + $0x10] sm:$0xff] (%p1191_p4) }
  0x35   : > { %335 = vst [vmem:[%s298_s30] sm:$0xff] (%p1191_p4), %v334_v2  ;;  %337 = vst [vmem:[%s298_s30 + $0x8] sm:$0xff] (%p1191_p4), %v336_v3 }
  0x36 PF: > { %346 = sbr.rel (%p1214_p12) target bundleno = 695 (0x2b7), region = 104  ;;  %s349_s29 = sand.u32 (!%p1214_p12), 1, %s1079_s22  }
  0x37   : > { %s800_s8 = sshll.u32 (!%p1214_p12), %s349_s29, 4 }
  0x38   : > { %s351_s10 = scalar_lea.vmem (!%p1214_p12), [#allocation4], %s800_s8  ;;  %s358_s15 = scalar_lea.vmem (!%p1214_p12), [#allocation5], %s800_s8 }
  0x3b   : > { %1062 = dma.done.wait (%p1218_p13), [#allocation7], 512  }
  0x3c   : > { %1064 = vsyncadd (%p1218_p13), [#allocation7], 4294966784  ;;  %s1255_s2 = scalar_lea.vmem [#allocation9], %s800_s8  ;;  %p804_p4 = scmp.ne.s32.totalorder %s1087_s24, 0 }
  0x3e   : > { %400 = sbr.rel (%p804_p4) target bundleno = 70 (0x46), region = 120 }
  0x43   : > { %vm401_vm0 = vcmask 254976   ;;  %vm403_vm1 = vcmask 1024   ;;  %v1100_v4 = vmov 0.0  }
  0x44   : > { %402 = vst.msk [vmem:[#allocation2] sm:$0x3] %vm401_vm0, %v1100_v4 }
  0x45   : > { %404 = vst.msk [vmem:[#allocation3] sm:$0x3] %vm403_vm1, %v1100_v4 }
  0x46 PF: > { %v407_v5 = vld [vmem:[%s358_s15] sm:$0xff]  ;;  %v408_v6 = vld [vmem:[%s358_s15 + $0x8] sm:$0xff]  ;;  %v1101_v8 = vmov 0.0   ;;  %vm1102_vm2 = vmmov 0   ;;  %vm423_vm3 = vcmask 261120  }
  0x47   : > { %v411_v7 = vld [vmem:[#allocation6 + $0x10] sm:$0xff]  ;;  %825 = vmatprep.subr.bf16.mxu0 %v1101_v8  ;;  %v412_v9 = vld [vmem:[#allocation6 + $0x18] sm:$0xff]  ;;  %v409_v10 = vld [vmem:[#allocation6] sm:$0xff]  ;;  %829 = vmatprep.mubr.msk.bf16.mxu0 %vm1102_vm2, %v1101_v8 }
  0x48   : > { %v410_v11 = vld [vmem:[#allocation6 + $0x8] sm:$0xff]  ;;  %v1260_v12 = vpack.c.bf16 %v412_v9, %v411_v7  ;;  %v405_v14 = vld [vmem:[%s351_s10] sm:$0xff]  ;;  %v805_v17 = vld [vmem:[%s1367_s3] ss:$0 sm:$0xff] }
  0x49   : > { %v1263_v13 = vpack.c.bf16 %v410_v11, %v409_v10  ;;  %v406_v15 = vld [vmem:[%s351_s10 + $0x8] sm:$0xff] }
  0x4a   : > { %826 = vmatpush3.bf16.msra.mxu0 %v1260_v12  ;;  %v415_v16 = vpack.c.bf16 %v406_v15, %v405_v14 }
  0x4b   : > { %827 = vmatprep.subr.bf16.mxu0 %v1101_v8 }
  0x4e   : > { %828 = vmatpush3.bf16.msra.mxu0 %v1263_v13 }
  0x51   : > { %830 = vmatmul.mubr.msk.bf16.vlgmr.msra.gmra.mxu0 %vm423_vm3, %v415_v16 }
 0x111   : > { %v461_v18 = vpop.f32.mrf.mxu0 }
 0x112   : > { %v462_v19 = vadd.f32 %v805_v17, %v461_v18 }
 0x113   : > { %v831_v20 = vpop.f32.mrf.mxu0 }
 0x114   : > { %468 = vst.msk [vmem:[%s1255_s2] sm:$0xff] %vm423_vm3, %v462_v19  ;;  %472 = sbr.rel (%p804_p4) target bundleno = 285 (0x11d), region = 124 }
 0x115   : > { %v464_v21 = vpop.f32.mrf.mxu0 }
 0x116   : > { %v465_v22 = vadd.f32 %v805_v17, %v464_v21 }
 0x117   : > { %v832_v23 = vpop.f32.mrf.mxu0 }
 0x118   : > { %469 = vst.msk [vmem:[%s1255_s2 + $0x8] sm:$0xff] %vm423_vm3, %v465_v22 }
 0x119   : > { %v475_v24 = vrot.slane %v465_v22, 7  ;;  %vm476_vm4 = vcmask 1041409   ;;  %vm479_vm5 = vcmask 254976  }
 0x11b   : > { %v477_v25 = vsel %vm476_vm4, %v475_v24, %v462_v19 }
 0x11c   : > { %480 = vst.msk [vmem:[#allocation10] sm:$0x3] %vm479_vm5, %v477_v25 }
 0x11d PF: > { %v1103_v26 = vmov 0   ;;  %vm517_vm6 = vcmask 7168   ;;  %vm510_vm7 = vcmask 1041409   ;;  %v516_v39 = vld [vmem:[#allocation3] sm:$0x3]  ;;  %vm537_vm8 = vcmask 1024  }
 0x11e   : > { %933 = vset.pattern.permute.xlu0 %v1103_v26  ;;  %v518_v27 = vsel %vm517_vm6, %v407_v5, 0.0  ;;  %v525_v28 = vsel %vm517_vm6, %v408_v6, 0.0  ;;  %v481_v61 = vld [vmem:[#allocation2] sm:$0x3]  ;;  %vm514_vm9 = vcmask 254976   ;;  %p808_p5 = scmp.ne.s32.totalorder %s1087_s24, 1 }
 0x11f   : > { %484 = vperm.xlu0 %933, %v407_v5   ;;  %v519_v29 = vrot.slane %v518_v27, 4  ;;  %v526_v30 = vrot.slane %v525_v28, 4 }
 0x121   : > { %v520_v31 = vadd.f32 %v519_v29, %v518_v27  ;;  %v527_v32 = vadd.f32 %v526_v30, %v525_v28 }
 0x123   : > { %489 = vperm.xlu0 %933, %v408_v6   ;;  %v521_v33 = vrot.slane %v520_v31, 2  ;;  %v528_v34 = vrot.slane %v527_v32, 2 }
 0x125   : > { %v522_v35 = vadd.f32 %v521_v33, %v520_v31  ;;  %v529_v36 = vadd.f32 %v528_v34, %v527_v32 }
 0x127   : > { %v523_v37 = vrot.slane %v522_v35, 1  ;;  %v530_v38 = vrot.slane %v529_v36, 1 }
 0x129   : > { %v524_v40 = vadd.f32 %v523_v37, %v522_v35  ;;  %v531_v41 = vadd.f32 %v530_v38, %v529_v36 }
 0x12b   : > { %v534_v42 = vsel %vm510_vm7, %v531_v41, %v524_v40 }
 0x12c   : > { %v536_v43 = vadd.f32 %v534_v42, %v516_v39 }
 0x12e   : > { %538 = vst.msk [vmem:[#allocation3] sm:$0x3] %vm537_vm8, %v536_v43 }
 0x19a   : > { %v485_v44 = vpop.permute.xlu0 %484 }
 0x19b   : > { %v492_v45 = vmul.f32 %v485_v44, %v405_v14 }
 0x19d   : > { %v494_v46 = vsel %vm423_vm3, %v492_v45, 0.0 }
 0x19e   : > { %v495_v47 = vrot.slane %v494_v46, 4  ;;  %v490_v48 = vpop.permute.xlu0 %489 }
 0x19f   : > { %v493_v49 = vmul.f32 %v490_v48, %v406_v15 }
 0x1a0   : > { %v496_v50 = vadd.f32 %v495_v47, %v494_v46 }
 0x1a1   : > { %v501_v51 = vsel %vm423_vm3, %v493_v49, 0.0 }
 0x1a2   : > { %v497_v52 = vrot.slane %v496_v50, 2  ;;  %v502_v53 = vrot.slane %v501_v51, 4 }
 0x1a4   : > { %v498_v54 = vadd.f32 %v497_v52, %v496_v50  ;;  %v503_v55 = vadd.f32 %v502_v53, %v501_v51 }
 0x1a6   : > { %v504_v56 = vrot.slane %v503_v55, 2  ;;  %v499_v57 = vrot.slane %v498_v54, 1 }
 0x1a8   : > { %v505_v58 = vadd.f32 %v504_v56, %v503_v55  ;;  %v500_v60 = vadd.f32 %v499_v57, %v498_v54 }
 0x1aa   : > { %v506_v59 = vrot.slane %v505_v58, 1 }
 0x1ac   : > { %v507_v62 = vadd.f32 %v506_v59, %v505_v58 }
 0x1ad   : > { %542 = sbr.rel (%p808_p5) target bundleno = 642 (0x282), region = 128 }
 0x1ae   : > { %v511_v63 = vsel %vm510_vm7, %v507_v62, %v500_v60 }
 0x1af   : > { %v513_v0 = vadd.f32 %v511_v63, %v481_v61 }
 0x1b1   : > { %515 = vst.msk [vmem:[#allocation2] sm:$0x3] %vm514_vm9, %v513_v0 }
 0x1b2   : > { %v1104_v1 = vmov 0.0   ;;  %vm1105_vm10 = vmmov 0   ;;  %v544_v2 = vld [vmem:[#allocation3] sm:$0x3]  ;;  %v1106_v4 = vmov 0  }
 0x1b3   : > { %833 = vmatprep.subr.bf16.mxu0 %v1104_v1  ;;  %837 = vmatprep.mubr.msk.bf16.mxu0 %vm1105_vm10, %v1104_v1  ;;  %v602_v5 = vmax.f32 %v544_v2, 1e-09  ;;  %v809_v8 = vld [vmem:[%s1367_s3] ss:$0 sm:$0xff] }
 0x1b4   : > { %834 = vmatpush3.bf16.msra.mxu0 %v1260_v12  ;;  %934 = vset.pattern.permute.xlu0 %v1106_v4 }
 0x1b5   : > { %835 = vmatprep.subr.bf16.mxu0 %v1104_v1  ;;  %549 = vperm.xlu0 %934, %v544_v2   ;;  %935 = vrcp.f32 %v602_v5 }
 0x1b8   : > { %v543_v3 = vld [vmem:[#allocation2] sm:$0x3]  ;;  %836 = vmatpush3.bf16.msra.mxu0 %v1263_v13 }
 0x1b9   : > { %v545_v6 = vpack.c.bf16 %v543_v3, %v543_v3 }
 0x1bb   : > { %838 = vmatmul.mubr.msk.bf16.vlgmr.msra.gmra.mxu0 %vm423_vm3, %v545_v6 }
 0x1c2   : > { %v936_v7 = vpop.eup %935 }
 0x1c3   : > { %606 = vperm.xlu0 %934, %v936_v7  }
 0x230   : > { %v550_v9 = vpop.permute.xlu0 %549 }
 0x231   : > { %v558_v10 = vmul.f32 %v809_v8, %v550_v9 }
 0x23e   : > { %v607_v14 = vpop.permute.xlu0 %606 }
 0x27b   : > { %v596_v11 = vpop.f32.mrf.mxu0 }
 0x27c   : > { %v597_v12 = vadd.f32 %v596_v11, %v558_v10 }
 0x27d   : > { %v839_v15 = vpop.f32.mrf.mxu0 }
 0x27e   : > { %v609_v16 = vmul.f32 %v607_v14, %v597_v12 }
 0x27f   : > { %v599_v17 = vpop.f32.mrf.mxu0 }
 0x280   : > { %610 = vst.msk [vmem:[#allocation12] sm:$0x3] %vm514_vm9, %v609_v16 }
 0x281   : > { %v840_v18 = vpop.f32.mrf.mxu0 }
 0x282 PF: > { %s1107_s18 = smov [#allocation10]   ;;  %s812_s20 = sshll.u32 %s1087_s24, 7 }
 0x283   : > { %s643_s19 = sshll.u32 %s1107_s18, 4  ;;  %p1384_p12 = scmp.ne.s32.totalorder %s1376_s7, 0  ;;  %s644_s19 = int_to_ptr.vmem [resolvable:$true] %s643_s19 }
 0x284   : > { %s963_s27 = scalar_lea.vmem %s644_s19, 32  ;;  %p970_p1 = scmp.lt.s32.totalorder %s644_s19, %s644_s19 }
 0x285   : > { %p964_p11 = scmp.ne.s32.totalorder %s644_s19, %s963_s27  ;;  %p971_p2 = scmp.lt.s32.totalorder %s963_s27, %s963_s27 }
 0x287   : > { %p965_p13 = pnand %p964_p11, %p1384_p12  ;;  %p972_p6 = por %p971_p2, %p970_p1 }
 0x289   : > { %p966_p0 = pneg %p965_p13 }
 0x28b   : > { %p973_p7 = pnand %p972_p6, %p966_p0 }
 0x28d   : > { %976 = shalt.err (!%p973_p7)
}
 0x28e   : > { %847 = dma.vmem_to_hbm [thread:$0]  (%p1384_p12), %s644_s19, 32, %s1369_s5, [#allocation11]  }
 0x28f   : > { %s1300_s10 = scalar_lea.hbm %s1368_s4, %s812_s20  ;;  %s627_s15 = sshll.u32 %s1255_s2, 4  ;;  %s1303_s15 = int_to_ptr.vmem [resolvable:$true] %s627_s15 }
 0x290   : > { %s1307_s13 = scalar_lea.sflag [#allocation8], %s349_s29  ;;  %s987_s14 = scalar_lea.vmem %s1303_s15, 256 }
 0x291   : > { %p988_p8 = scmp.ne.s32.totalorder %s1303_s15, %s987_s14  ;;  %p1385_p9 = scmp.ne.s32.totalorder %s1379_s9, 0 }
 0x292   : > { %s1108_s17 = smov [#allocation9]  }
 0x293   : > { %p989_p10 = pnand %p988_p8, %p1385_p9  ;;  %s991_s16 = sshll.u32 %s1108_s17, 4  ;;  %s992_s16 = int_to_ptr.vmem [resolvable:$false] %s991_s16 }
 0x294   : > { %s993_s18 = scalar_lea.vmem %s992_s16, 512  ;;  %p994_p5 = scmp.lt.s32.totalorder %s1303_s15, %s992_s16 }
 0x295   : > { %p990_p4 = pneg %p989_p10  ;;  %p995_p11 = scmp.lt.s32.totalorder %s993_s18, %s987_s14 }
 0x297   : > { %p996_p13 = por %p995_p11, %p994_p5 }
 0x299   : > { %p997_p0 = pnand %p996_p13, %p990_p4 }
 0x29b   : > { %1000 = shalt.err (!%p997_p0)
}
 0x29c   : > { %s1001_s29 = scalar_lea.hbm %s1300_s10, 256  ;;  %s1005_s20 = scalar_lea.hbm %s1368_s4, 512 }
 0x29d   : > { %p1002_p1 = scmp.ne.s32.totalorder %s1300_s10, %s1001_s29  ;;  %p1006_p7 = scmp.lt.s32.totalorder %s1300_s10, %s1368_s4 }
 0x29e   : > { %p1007_p8 = scmp.lt.s32.totalorder %s1005_s20, %s1001_s29 }
 0x29f   : > { %p1003_p2 = pnand %p1002_p1, %p1385_p9 }
 0x2a0   : > { %p1008_p10 = por %p1007_p8, %p1006_p7 }
 0x2a1   : > { %p1004_p6 = pneg %p1003_p2 }
 0x2a3   : > { %p1009_p4 = pnand %p1008_p10, %p1004_p6 }
 0x2a5   : > { %1012 = shalt.err (!%p1009_p4)
}
 0x2a6   : > { %s1109_s30 = smov 128   ;;  %s1110_s24 = smov 256  }
 0x2a7   : > { %s1111_s8 = smov 8   ;;  %s1112_s14 = smov [#allocation12]  }
 0x2a8   : > { %845 = dma.vmem_to_hbm [thread:$0]  (%p1385_p9), %s1303_s15, 256, %s1300_s10, %s1307_s13, %s1109_s30, %s1110_s24, %s1111_s8  }
 0x2a9   : > { %s656_s17 = sshll.u32 %s1112_s14, 4  ;;  %s657_s17 = int_to_ptr.vmem [resolvable:$true] %s656_s17 }
 0x2aa   : > { %s1013_s16 = scalar_lea.vmem %s657_s17, 32  ;;  %p1020_p0 = scmp.lt.s32.totalorder %s657_s17, %s657_s17 }
 0x2ab   : > { %p1014_p5 = scmp.ne.s32.totalorder %s657_s17, %s1013_s16  ;;  %p1021_p1 = scmp.lt.s32.totalorder %s1013_s16, %s1013_s16 }
 0x2ad   : > { %p1015_p11 = pnand %p1014_p5, %p1384_p12  ;;  %p1022_p2 = por %p1021_p1, %p1020_p0 }
 0x2af   : > { %p1016_p13 = pneg %p1015_p11 }
 0x2b1   : > { %p1023_p6 = pnand %p1022_p2, %p1016_p13 }
 0x2b3   : > { %1026 = shalt.err (!%p1023_p6)
}
 0x2b4   : > { %849 = dma.vmem_to_hbm [thread:$0]  (%p1384_p12), %s657_s17, 32, %s1370_s6, [#allocation11]  }
 0x2b5   : > { %1066 = dma.done.wait (%p1384_p12), [#allocation11], 64  }
 0x2b6   : > { %1068 = vsyncadd (%p1384_p12), [#allocation11], 4294967232 }
 0x2b7 PF: > { %s676_s9 = sand.u32 1, %s1075_s21   ;;  %p1386_p9 = scmp.ne.s32.totalorder %s1380_s12, 0 }
 0x2b8   : > { %s677_s10 = scalar_lea.sflag [#allocation8], %s676_s9 }
 0x2b9   : > { %p860_p7 = pnand %p794_p3, %p1386_p9 }
 0x2bb   : > { %p861_p8 = pneg %p860_p7 }
 0x2bd   : > { %1070 = dma.done.wait (%p861_p8), %s677_s10, 256  }
 0x2be   : > { %1072 = vsyncadd (%p861_p8), %s677_s10, 4294967040  ;;  %s22_s26 = sadd.s32 1, %s1095_s26   ;;  %s1387_s7 = sld [smem:[#allocation16_spill]] }
 0x2bf   : > { %p19_p10 = scmp.ge.s32.totalorder %s22_s26, 4   ;;  %s1388_s21 = smov %s1079_s22 }
 0x2c0   : > { %s1389_s22 = smov %s1083_s23  ;;  %s1390_s23 = smov %s1208_s11 }
 0x2c1   : > { %s1391_s24 = smov %s1091_s25  ;;  %21 = sbr.rel (!%p19_p10) target bundleno = 8 (0x8), region = 195 }
 0x2c4   : > { %s1392_s25 = smov %s1387_s7 }
 0x2c6   :  { %682 = vsyncpa [#allocation7], 1 }
 0x2c7   :  { %684 = vsyncpa [#allocation7 + $0x1], 1 }
 0x2c8   :  { %685 = vsyncpa [#allocation8], 1 }
 0x2c9   :  { %687 = vsyncpa [#allocation8 + $0x1], 1 }
 0x2ca   :  { %688 = vsyncpa [#allocation11], 1 }

</bundles_post_ra>
